<compile_context>
chip_gen: v7x
topology: tpu7x:2x2x1
jax: 0.10.0
libtpu: 0.0.40
codegen_flags: <defaults>
</compile_context>

<pallas_src>
import numpy as np
import jax
import jax.numpy as jnp
from jax.experimental import pallas as pl
from jax.experimental.pallas import tpu as pltpu


# ----------------------------- Pallas kernel ------------------------------ #
def maf_kernel(x_ref,
               w1_ref, b1_ref,
               w2_ref, b2_ref,
               w3_ref, b3_ref,
               w4s_ref, b4s_ref,
               w4t_ref, b4t_ref,
               z_ref, logdet_ref):
    x = x_ref[...]                                            # (dim, TB) f32

    # MADE-masked MLP in feature-major orientation: h = relu(W^T @ h_prev + b)
    h = jnp.dot(w1_ref[...], x, preferred_element_type=jnp.float32) + b1_ref[...]
    h = jnp.maximum(h, 0.0)
    h = jnp.dot(w2_ref[...], h, preferred_element_type=jnp.float32) + b2_ref[...]
    h = jnp.maximum(h, 0.0)
    h = jnp.dot(w3_ref[...], h, preferred_element_type=jnp.float32) + b3_ref[...]
    h = jnp.maximum(h, 0.0)

    # Output layer pre-split into the s-half and t-half -> aligned tiles.
    s = jnp.dot(w4s_ref[...], h, preferred_element_type=jnp.float32) + b4s_ref[...]   # (dim, TB)
    t = jnp.dot(w4t_ref[...], h, preferred_element_type=jnp.float32) + b4t_ref[...]   # (dim, TB)

    z_ref[...] = x * jnp.exp(s) + t                           # lane-dense store
    logdet_ref[...] = jnp.sum(s, axis=0, keepdims=True)       # (1, TB), lane-dense


# ------------------------------- wrapper ----------------------------------- #
def maf_forward(x, kernel_params, parity, *, block_b=128):
    """x: (B, dim) f32.  kernel_params: output of prepare_kernel_params."""
    B, dim = x.shape
    (w1t, b1t, w2t, b2t, w3t, b3t, w4s, b4s, w4t, b4t) = kernel_params
    nh = w1t.shape[0]
    assert B % block_b == 0, "batch must be a multiple of the batch tile"

    xT = x.T                                                  # (dim, B): batch on lanes

    full = lambda shape: pl.BlockSpec(shape, lambda i: (0, 0))  # grid-invariant block
    zT, logdet = pl.pallas_call(
        maf_kernel,
        out_shape=(jax.ShapeDtypeStruct((dim, B), jnp.float32),
                   jax.ShapeDtypeStruct((1, B), jnp.float32)),
        grid=(B // block_b,),
        in_specs=[
            pl.BlockSpec((dim, block_b), lambda i: (0, i)),   # x^T batch tile
            full((nh, dim)),  full((nh, 1)),                  # layer 1 (pre-masked)
            full((nh, nh)),   full((nh, 1)),                  # layer 2 (pre-masked)
            full((nh, nh)),   full((nh, 1)),                  # layer 3 (pre-masked)
            full((dim, nh)),  full((dim, 1)),                 # out layer, s-half
            full((dim, nh)),  full((dim, 1)),                 # out layer, t-half
        ],
        out_specs=(pl.BlockSpec((dim, block_b), lambda i: (0, i)),
                   pl.BlockSpec((1, block_b), lambda i: (0, i))),
        compiler_params=pltpu.CompilerParams(
            dimension_semantics=("parallel",)),
    )(xT, w1t, b1t, w2t, b2t, w3t, b3t, w4s, b4s, w4t, b4t)

    z = zT.T                                                  # back to (B, dim)
    if parity:                                                # static flip, fuses with the transpose
        z = z[:, ::-1]
    return z, logdet.reshape(B)


# -------- one-time parameter prep: pre-mask, transpose, split s/t ---------- #
def prepare_kernel_params(params):
    (w1, m1, b1, w2, m2, b2, w3, m3, b3, w4, m4, b4) = params
    dim = w1.shape[0]
    w1t = (w1 * m1).T                       # (nh, dim)
    w2t = (w2 * m2).T                       # (nh, nh)
    w3t = (w3 * m3).T                       # (nh, nh)
    w4m = w4 * m4                           # (nh, 2*dim)
    w4s = w4m[:, :dim].T                    # (dim, nh)  -> s
    w4t = w4m[:, dim:].T                    # (dim, nh)  -> t
    b1t = b1.reshape(-1, 1)                 # (nh, 1)
    b2t = b2.reshape(-1, 1)
    b3t = b3.reshape(-1, 1)
    b4s = b4[:, :dim].reshape(-1, 1)        # (dim, 1)
    b4t = b4[:, dim:].reshape(-1, 1)        # (dim, 1)
    return (w1t, b1t, w2t, b2t, w3t, b3t, w4s, b4s, w4t, b4t)


# ----------------------- deterministic parameter init ---------------------- #
def build_made_masks(dim, nh):
    """Deterministic MADE degrees/masks (natural ordering), (in, out) layout."""
    in_deg = np.arange(dim)
    prev = in_deg
    masks = []
    for _ in range(3):                                # three hidden layers
        deg = np.arange(nh) % max(1, dim - 1)         # degrees in [0, dim-2]
        masks.append((prev[:, None] <= deg[None, :]).astype(np.float32))
        prev = deg
    out_mask = (prev[:, None] < np.arange(dim)[None, :]).astype(np.float32)
    out_mask = np.concatenate([out_mask, out_mask], axis=1)   # nout = 2*dim
    return masks[0], masks[1], masks[2], out_mask


def init_params(key, dim, nh):
    def linear(k, fan_in, fan_out):
        kw, kb = jax.random.split(k)
        bound = 1.0 / np.sqrt(fan_in)
        w = jax.random.uniform(kw, (fan_in, fan_out), jnp.float32, -bound, bound)
        b = jax.random.uniform(kb, (1, fan_out), jnp.float32, -bound, bound)
        return w, b

    k1, k2, k3, k4 = jax.random.split(key, 4)
    w1, b1 = linear(k1, dim, nh)
    w2, b2 = linear(k2, nh, nh)
    w3, b3 = linear(k3, nh, nh)
    w4, b4 = linear(k4, nh, 2 * dim)
    m1, m2, m3, m4 = build_made_masks(dim, nh)
    m1, m2, m3, m4 = (jnp.asarray(m) for m in (m1, m2, m3, m4))
    return (w1, m1, b1, w2, m2, b2, w3, m3, b3, w4, m4, b4)


# --------------------------- pure-JAX reference ----------------------------- #
def maf_reference(x, params, parity):
    (w1, m1, b1, w2, m2, b2, w3, m3, b3, w4, m4, b4) = params
    dim = x.shape[1]
    h = jax.nn.relu(x @ (w1 * m1) + b1)
    h = jax.nn.relu(h @ (w2 * m2) + b2)
    h = jax.nn.relu(h @ (w3 * m3) + b3)
    st = h @ (w4 * m4) + b4
    s, t = st[:, :dim], st[:, dim:]
    z = x * jnp.exp(s) + t
    if parity:
        z = z[:, ::-1]
    return z, jnp.sum(s, axis=1)


# TODO(synk): MAF.backward (the sequential per-dimension inverse) is not
# implemented here; only the forward pass was requested.

if __name__ == "__main__":
    dim, nh, B = 8, 24, 256          # B = 2 * 128-lane batch tiles -> grid of 2
    parity = True

    key = jax.random.PRNGKey(0)
    kx, kp = jax.random.split(key)
    x = jax.random.normal(kx, (B, dim), jnp.float32)
    raw_params = init_params(kp, dim, nh)
    kernel_params = prepare_kernel_params(raw_params)

    z, log_det = maf_forward(x, kernel_params, parity, block_b=128)
    jax.block_until_ready((z, log_det))

    z_ref, ld_ref = maf_reference(x, raw_params, parity)
    np.testing.assert_allclose(np.asarray(z), np.asarray(z_ref),
                               rtol=2e-2, atol=2e-2)
    np.testing.assert_allclose(np.asarray(log_det), np.asarray(ld_ref),
                               rtol=2e-2, atol=2e-2)
    print("KERNEL_OK")
</pallas_src>

<mosaic_0001>
module attributes {stable_mosaic.version = 11 : i64} {
  func.func @maf_kernel(%arg0: i32, %arg1: memref<8x128xf32, #tpu.memory_space<vmem>>, %arg2: memref<24x8xf32, #tpu.memory_space<vmem>>, %arg3: memref<24x1xf32, #tpu.memory_space<vmem>>, %arg4: memref<24x24xf32, #tpu.memory_space<vmem>>, %arg5: memref<24x1xf32, #tpu.memory_space<vmem>>, %arg6: memref<24x24xf32, #tpu.memory_space<vmem>>, %arg7: memref<24x1xf32, #tpu.memory_space<vmem>>, %arg8: memref<8x24xf32, #tpu.memory_space<vmem>>, %arg9: memref<8x1xf32, #tpu.memory_space<vmem>>, %arg10: memref<8x24xf32, #tpu.memory_space<vmem>>, %arg11: memref<8x1xf32, #tpu.memory_space<vmem>>, %arg12: memref<8x128xf32, #tpu.memory_space<vmem>>, %arg13: memref<1x128xf32, #tpu.memory_space<vmem>>) attributes {dimension_semantics = [#tpu.dimension_semantics<parallel>], iteration_bounds = array<i64: 2>, scalar_prefetch = 0 : i64, scratch_operands = 0 : i64, tpu.core_type = #tpu.core_type<tc>, window_params = [{transform_indices = @transform_0, window_bounds = array<i64: 8, 128>}, {pipeline_mode = #tpu.pipeline_mode<synchronous>, transform_indices = @transform_1, window_bounds = array<i64: 24, 8>}, {pipeline_mode = #tpu.pipeline_mode<synchronous>, transform_indices = @transform_2, window_bounds = array<i64: 24, 1>}, {pipeline_mode = #tpu.pipeline_mode<synchronous>, transform_indices = @transform_3, window_bounds = array<i64: 24, 24>}, {pipeline_mode = #tpu.pipeline_mode<synchronous>, transform_indices = @transform_4, window_bounds = array<i64: 24, 1>}, {pipeline_mode = #tpu.pipeline_mode<synchronous>, transform_indices = @transform_5, window_bounds = array<i64: 24, 24>}, {pipeline_mode = #tpu.pipeline_mode<synchronous>, transform_indices = @transform_6, window_bounds = array<i64: 24, 1>}, {pipeline_mode = #tpu.pipeline_mode<synchronous>, transform_indices = @transform_7, window_bounds = array<i64: 8, 24>}, {pipeline_mode = #tpu.pipeline_mode<synchronous>, transform_indices = @transform_8, window_bounds = array<i64: 8, 1>}, {pipeline_mode = #tpu.pipeline_mode<synchronous>, transform_indices = @transform_9, window_bounds = array<i64: 8, 24>}, {pipeline_mode = #tpu.pipeline_mode<synchronous>, transform_indices = @transform_10, window_bounds = array<i64: 8, 1>}, {transform_indices = @transform_11, window_bounds = array<i64: 8, 128>}, {transform_indices = @transform_12, window_bounds = array<i64: 1, 128>}]} {
    %c0 = arith.constant 0 : index
    %c0_0 = arith.constant 0 : index
    %0 = vector.load %arg1[%c0, %c0_0] : memref<8x128xf32, #tpu.memory_space<vmem>>, vector<8x128xf32>
    %c0_1 = arith.constant 0 : index
    %c0_2 = arith.constant 0 : index
    %1 = vector.load %arg2[%c0_1, %c0_2] : memref<24x8xf32, #tpu.memory_space<vmem>>, vector<24x8xf32>
    %cst = arith.constant dense<0.000000e+00> : vector<24x128xf32>
    %2 = tpu.matmul %1, %0, %cst {dimension_numbers = #tpu.dot_dimension_numbers<[1], [0], [0], [1], [0, 0, 1, 1], [], []>} : vector<24x8xf32>, vector<8x128xf32>, vector<24x128xf32> -> vector<24x128xf32>
    %c0_3 = arith.constant 0 : index
    %c0_4 = arith.constant 0 : index
    %3 = vector.load %arg3[%c0_3, %c0_4] : memref<24x1xf32, #tpu.memory_space<vmem>>, vector<24x1xf32>
    %4 = vector.broadcast %3 : vector<24x1xf32> to vector<24x128xf32>
    %5 = arith.addf %2, %4 : vector<24x128xf32>
    %cst_5 = arith.constant 0.000000e+00 : f32
    %6 = vector.broadcast %cst_5 : f32 to vector<24x128xf32>
    %7 = arith.maximumf %5, %6 : vector<24x128xf32>
    %c0_6 = arith.constant 0 : index
    %c0_7 = arith.constant 0 : index
    %8 = vector.load %arg4[%c0_6, %c0_7] : memref<24x24xf32, #tpu.memory_space<vmem>>, vector<24x24xf32>
    %cst_8 = arith.constant dense<0.000000e+00> : vector<24x128xf32>
    %9 = tpu.matmul %8, %7, %cst_8 {dimension_numbers = #tpu.dot_dimension_numbers<[1], [0], [0], [1], [0, 0, 1, 1], [], []>} : vector<24x24xf32>, vector<24x128xf32>, vector<24x128xf32> -> vector<24x128xf32>
    %c0_9 = arith.constant 0 : index
    %c0_10 = arith.constant 0 : index
    %10 = vector.load %arg5[%c0_9, %c0_10] : memref<24x1xf32, #tpu.memory_space<vmem>>, vector<24x1xf32>
    %11 = vector.broadcast %10 : vector<24x1xf32> to vector<24x128xf32>
    %12 = arith.addf %9, %11 : vector<24x128xf32>
    %cst_11 = arith.constant 0.000000e+00 : f32
    %13 = vector.broadcast %cst_11 : f32 to vector<24x128xf32>
    %14 = arith.maximumf %12, %13 : vector<24x128xf32>
    %c0_12 = arith.constant 0 : index
    %c0_13 = arith.constant 0 : index
    %15 = vector.load %arg6[%c0_12, %c0_13] : memref<24x24xf32, #tpu.memory_space<vmem>>, vector<24x24xf32>
    %cst_14 = arith.constant dense<0.000000e+00> : vector<24x128xf32>
    %16 = tpu.matmul %15, %14, %cst_14 {dimension_numbers = #tpu.dot_dimension_numbers<[1], [0], [0], [1], [0, 0, 1, 1], [], []>} : vector<24x24xf32>, vector<24x128xf32>, vector<24x128xf32> -> vector<24x128xf32>
    %c0_15 = arith.constant 0 : index
    %c0_16 = arith.constant 0 : index
    %17 = vector.load %arg7[%c0_15, %c0_16] : memref<24x1xf32, #tpu.memory_space<vmem>>, vector<24x1xf32>
    %18 = vector.broadcast %17 : vector<24x1xf32> to vector<24x128xf32>
    %19 = arith.addf %16, %18 : vector<24x128xf32>
    %cst_17 = arith.constant 0.000000e+00 : f32
    %20 = vector.broadcast %cst_17 : f32 to vector<24x128xf32>
    %21 = arith.maximumf %19, %20 : vector<24x128xf32>
    %c0_18 = arith.constant 0 : index
    %c0_19 = arith.constant 0 : index
    %22 = vector.load %arg8[%c0_18, %c0_19] : memref<8x24xf32, #tpu.memory_space<vmem>>, vector<8x24xf32>
    %cst_20 = arith.constant dense<0.000000e+00> : vector<8x128xf32>
    %23 = tpu.matmul %22, %21, %cst_20 {dimension_numbers = #tpu.dot_dimension_numbers<[1], [0], [0], [1], [0, 0, 1, 1], [], []>} : vector<8x24xf32>, vector<24x128xf32>, vector<8x128xf32> -> vector<8x128xf32>
    %c0_21 = arith.constant 0 : index
    %c0_22 = arith.constant 0 : index
    %24 = vector.load %arg9[%c0_21, %c0_22] : memref<8x1xf32, #tpu.memory_space<vmem>>, vector<8x1xf32>
    %25 = vector.broadcast %24 : vector<8x1xf32> to vector<8x128xf32>
    %26 = arith.addf %23, %25 : vector<8x128xf32>
    %c0_23 = arith.constant 0 : index
    %c0_24 = arith.constant 0 : index
    %27 = vector.load %arg10[%c0_23, %c0_24] : memref<8x24xf32, #tpu.memory_space<vmem>>, vector<8x24xf32>
    %cst_25 = arith.constant dense<0.000000e+00> : vector<8x128xf32>
    %28 = tpu.matmul %27, %21, %cst_25 {dimension_numbers = #tpu.dot_dimension_numbers<[1], [0], [0], [1], [0, 0, 1, 1], [], []>} : vector<8x24xf32>, vector<24x128xf32>, vector<8x128xf32> -> vector<8x128xf32>
    %c0_26 = arith.constant 0 : index
    %c0_27 = arith.constant 0 : index
    %29 = vector.load %arg11[%c0_26, %c0_27] : memref<8x1xf32, #tpu.memory_space<vmem>>, vector<8x1xf32>
    %30 = vector.broadcast %29 : vector<8x1xf32> to vector<8x128xf32>
    %31 = arith.addf %28, %30 : vector<8x128xf32>
    %32 = math.exp %26 : vector<8x128xf32>
    %33 = arith.mulf %0, %32 : vector<8x128xf32>
    %34 = arith.addf %33, %31 : vector<8x128xf32>
    %c0_28 = arith.constant 0 : index
    %c0_29 = arith.constant 0 : index
    %35 = vector.load %arg12[%c0_28, %c0_29] : memref<8x128xf32, #tpu.memory_space<vmem>>, vector<8x128xf32>
    tpu.vector_store %arg12[%c0_28, %c0_29], %34 {strides = array<i32>} : memref<8x128xf32, #tpu.memory_space<vmem>>, vector<8x128xf32>,
    %cst_30 = arith.constant dense<0.000000e+00> : vector<128xf32>
    %36 = vector.multi_reduction <add>, %26, %cst_30 [0] : vector<8x128xf32> to vector<128xf32>
    %37 = vector.shape_cast %36 : vector<128xf32> to vector<1x128xf32>
    %c0_31 = arith.constant 0 : index
    %c0_32 = arith.constant 0 : index
    %38 = vector.load %arg13[%c0_31, %c0_32] : memref<1x128xf32, #tpu.memory_space<vmem>>, vector<1x128xf32>
    tpu.vector_store %arg13[%c0_31, %c0_32], %37 {strides = array<i32>} : memref<1x128xf32, #tpu.memory_space<vmem>>, vector<1x128xf32>,
    return
  }
  func.func @transform_0(%arg0: i32) -> (i32, i32) {
    %c0_i32 = arith.constant 0 : i32
    %c0_i32_0 = arith.constant 0 : i32
    return %c0_i32, %arg0 : i32, i32
  }
  func.func @transform_1(%arg0: i32) -> (i32, i32) {
    %c0_i32 = arith.constant 0 : i32
    %c0_i32_0 = arith.constant 0 : i32
    %c0_i32_1 = arith.constant 0 : i32
    return %c0_i32, %c0_i32_0 : i32, i32
  }
  func.func @transform_2(%arg0: i32) -> (i32, i32) {
    %c0_i32 = arith.constant 0 : i32
    %c0_i32_0 = arith.constant 0 : i32
    %c0_i32_1 = arith.constant 0 : i32
    return %c0_i32, %c0_i32_0 : i32, i32
  }
  func.func @transform_3(%arg0: i32) -> (i32, i32) {
    %c0_i32 = arith.constant 0 : i32
    %c0_i32_0 = arith.constant 0 : i32
    %c0_i32_1 = arith.constant 0 : i32
    return %c0_i32, %c0_i32_0 : i32, i32
  }
  func.func @transform_4(%arg0: i32) -> (i32, i32) {
    %c0_i32 = arith.constant 0 : i32
    %c0_i32_0 = arith.constant 0 : i32
    %c0_i32_1 = arith.constant 0 : i32
    return %c0_i32, %c0_i32_0 : i32, i32
  }
  func.func @transform_5(%arg0: i32) -> (i32, i32) {
    %c0_i32 = arith.constant 0 : i32
    %c0_i32_0 = arith.constant 0 : i32
    %c0_i32_1 = arith.constant 0 : i32
    return %c0_i32, %c0_i32_0 : i32, i32
  }
  func.func @transform_6(%arg0: i32) -> (i32, i32) {
    %c0_i32 = arith.constant 0 : i32
    %c0_i32_0 = arith.constant 0 : i32
    %c0_i32_1 = arith.constant 0 : i32
    return %c0_i32, %c0_i32_0 : i32, i32
  }
  func.func @transform_7(%arg0: i32) -> (i32, i32) {
    %c0_i32 = arith.constant 0 : i32
    %c0_i32_0 = arith.constant 0 : i32
    %c0_i32_1 = arith.constant 0 : i32
    return %c0_i32, %c0_i32_0 : i32, i32
  }
  func.func @transform_8(%arg0: i32) -> (i32, i32) {
    %c0_i32 = arith.constant 0 : i32
    %c0_i32_0 = arith.constant 0 : i32
    %c0_i32_1 = arith.constant 0 : i32
    return %c0_i32, %c0_i32_0 : i32, i32
  }
  func.func @transform_9(%arg0: i32) -> (i32, i32) {
    %c0_i32 = arith.constant 0 : i32
    %c0_i32_0 = arith.constant 0 : i32
    %c0_i32_1 = arith.constant 0 : i32
    return %c0_i32, %c0_i32_0 : i32, i32
  }
  func.func @transform_10(%arg0: i32) -> (i32, i32) {
    %c0_i32 = arith.constant 0 : i32
    %c0_i32_0 = arith.constant 0 : i32
    %c0_i32_1 = arith.constant 0 : i32
    return %c0_i32, %c0_i32_0 : i32, i32
  }
  func.func @transform_11(%arg0: i32) -> (i32, i32) {
    %c0_i32 = arith.constant 0 : i32
    %c0_i32_0 = arith.constant 0 : i32
    return %c0_i32, %arg0 : i32, i32
  }
  func.func @transform_12(%arg0: i32) -> (i32, i32) {
    %c0_i32 = arith.constant 0 : i32
    %c0_i32_0 = arith.constant 0 : i32
    return %c0_i32, %arg0 : i32, i32
  }
}

</mosaic_0001>

<bundles_post_ra>
// kernel: tpu_custom_call.1
= control target key start
LH: loop header
LB: loop body
LE: loop exit
PB: predicated region body
PF: predicated region fallthrough
CT: control target
= control target key end

     0   :  { %s1642_s0 = inlined_call_operand.vmem [shape: f32[8,256], index: 0, kind: input, shape index: {}]   ;;  %s1643_s1 = inlined_call_operand.vmem [shape: f32[24,8], index: 1, kind: input, shape index: {}]   ;;  %s1644_s2 = inlined_call_operand.vmem [shape: f32[24,1], index: 2, kind: input, shape index: {}]   ;;  %s1645_s3 = inlined_call_operand.vmem [shape: f32[24,24], index: 3, kind: input, shape index: {}]   ;;  %s1646_s4 = inlined_call_operand.vmem [shape: f32[24,1], index: 4, kind: input, shape index: {}]   ;;  %s1647_s5 = inlined_call_operand.vmem [shape: f32[24,24], index: 5, kind: input, shape index: {}]   ;;  %s1648_s6 = inlined_call_operand.vmem [shape: f32[24,1], index: 6, kind: input, shape index: {}]   ;;  %s1649_s7 = inlined_call_operand.vmem [shape: f32[8,24], index: 7, kind: input, shape index: {}]   ;;  %s1650_s8 = inlined_call_operand.vmem [shape: f32[8,1], index: 8, kind: input, shape index: {}]   ;;  %s1651_s9 = inlined_call_operand.vmem [shape: f32[8,24], index: 9, kind: input, shape index: {}]   ;;  %s1652_s10 = inlined_call_operand.vmem [shape: f32[8,1], index: 10, kind: input, shape index: {}]   ;;  %s1653_s11 = inlined_call_operand.hbm [shape: f32[8,256], index: 11, kind: output, shape index: {0}]   ;;  %s1654_s12 = inlined_call_operand.hbm [shape: f32[1,256], index: 12, kind: output, shape index: {1}]  }
   0x1   :  { %1656 = sst [smem:[#allocation10_spill]] %s1642_s0 }
   0x2   :  { %1657 = sst [smem:[#allocation11_spill]] %s1643_s1 }
   0x3   :  { %18 = vsyncpa [#allocation3], 0 }
   0x4   :  { %20 = vsyncpa [#allocation3 + $0x1], 0 }
   0x5   :  { %21 = vsyncpa [#allocation5], 0 }
   0x6   :  { %23 = vsyncpa [#allocation5 + $0x1], 0  ;;  %s1387_s21 = smov 0   ;;  %s1389_s22 = smov 0  }
   0x7   :  { %s1391_s23 = smov 0   ;;  %s1393_s24 = smov 0  }
   0x8 LB: > { %1658 = sst [smem:[#allocation8_spill]] %s1310_s23  ;;  %s1408_s25 = sadd.s32 4294967295, %s1314_s24   ;;  %s1314_s24 = sphi %s1393_s24, %s1670_s24   ;;  %s1310_s23 = sphi %s1391_s23, %s1667_s23   ;;  %s1306_s22 = sphi %s1389_s22, %s1669_s22   ;;  %s1302_s21 = sphi %s1387_s21, %s1668_s21  }
   0x9   : > { %s1051_s26 = sadd.s32 4294967294, %s1314_s24   ;;  %s1412_s27 = sadd.s32 1, %s1314_s24  }
   0xa   : > { %s272_s28 = sadd.s32 1, %s1310_s23  ;;  %s269_s29 = ssub.s32 %s1314_s24, %s1412_s27 }
   0xb   : > { %p282_p0 = scmp.ne.s32.totalorder %s1310_s23, %s1306_s22  ;;  %p270_p1 = scmp.eq.s32.totalorder %s269_s29, 0 }
   0xc   : > { %p283_p2 = scmp.eq.s32.totalorder %s1408_s25, 1  ;;  %p288_p3 = scmp.ne.s32.totalorder %s1306_s22, %s1302_s21 }
   0xd   : > { %p289_p4 = scmp.eq.s32.totalorder %s1051_s26, 1  ;;  %p1054_p7 = scmp.ge.s32.totalorder %s1314_s24, 1 }
   0xe   : > { %s1423_s30 = scalar_select %p270_p1, %s1310_s23, %s272_s28  }
   0xf   : > { %p1425_p5 = por %p283_p2, %p282_p0  ;;  %p1429_p6 = por %p289_p4, %p288_p3 }
  0x10   : > { %1659 = sst [smem:[#allocation9_spill]] %s1423_s30  ;;  %p370_p8 = scmp.lt.s32.totalorder %s1314_s24, 3 }
  0x12   : > { %p371_p9 = pnand %p1054_p7, %p370_p8 }
  0x13   : > { %p415_p10 = scmp.lt.s32.totalorder (!%p371_p9), %s1408_s25, 1  ;;  %v1316_v0 = vmov (!%p371_p9), 0.0   ;;  %vm1317_vm0 = vmmov (!%p371_p9), 0   ;;  %v423_v1 = vld [vmem:[%s1644_s2] sm:$0xff] (!%p371_p9)  ;;  %v1318_v2 = vmov (!%p371_p9), 0   ;;  %v425_v3 = vld [vmem:[%s1644_s2 + $0x10] sm:$0xff] (!%p371_p9) }
  0x14   : > { %374 = sbr.rel (%p371_p9) target bundleno = 979 (0x3d3), region = 64  ;;  %1097 = vmatprep.subr.mxu0 (!%p371_p9), %v1316_v0  ;;  %1099 = vmatprep.mubr.msk.f32.mxu0 (!%p371_p9), %vm1317_vm0, %v1316_v0  ;;  %v424_v4 = vld [vmem:[%s1644_s2 + $0x8] sm:$0xff] (!%p371_p9)  ;;  %s1662_s0 = sld [smem:[#allocation10_spill]] (!%p371_p9)  ;;  %vm441_vm1 = vcmask (!%p371_p9), 64512   ;;  %v537_v6 = vld [vmem:[%s1646_s4] sm:$0xff] (!%p371_p9)  ;;  %v539_v10 = vld [vmem:[%s1646_s4 + $0x10] sm:$0xff] (!%p371_p9) }
  0x15   : > { %1216 = vset.pattern.permute.xlu0 (!%p371_p9), %v1318_v2  ;;  %1217 = vset.pattern.permute.xlu1 (!%p371_p9), %v1318_v2  ;;  %s1663_s1 = sld [smem:[#allocation11_spill]] (!%p371_p9)  ;;  %v538_v8 = vld [vmem:[%s1646_s4 + $0x8] sm:$0xff] (!%p371_p9)  ;;  %v651_v11 = vld [vmem:[%s1648_s6] sm:$0xff] (!%p371_p9)  ;;  %v653_v14 = vld [vmem:[%s1648_s6 + $0x10] sm:$0xff] (!%p371_p9)  ;;  %v1319_v17 = vmov (!%p371_p9), 0.0|0.0   ;;  %vm555_vm2 = vcmask (!%p371_p9), 195584  }
  0x16   : > { %428 = vperm.xlu0 (!%p371_p9), %1216, %v423_v1   ;;  %438 = vperm.xlu1 (!%p371_p9), %1217, %v425_v3   ;;  %v652_v13 = vld [vmem:[%s1648_s6 + $0x8] sm:$0xff] (!%p371_p9)  ;;  %v762_v15 = vld [vmem:[%s1650_s8] sm:$0xff] (!%p371_p9)  ;;  %v536_v36 = vld [vmem:[%s1645_s3 + $0x10] sm:$0xff] (!%p371_p9)  ;;  %s1552_s26 = sand.u32 (!%p371_p9), 1, %s1306_s22   ;;  %s1070_s30 = sshll.u32 (!%p371_p9), %s1408_s25, 4 }
  0x17   : > { %1114 = vmatprep.mubr.msk.f32.mxu1 (!%p371_p9), %vm1317_vm0, %v1316_v0  ;;  %v842_v16 = vld [vmem:[%s1652_s10] sm:$0xff] (!%p371_p9)  ;;  %1156 = vmatprep.subr.bf16.mxu1 (!%p371_p9), %v1319_v17  ;;  %v535_v35 = vld [vmem:[%s1645_s3 + $0x8] sm:$0xff] (!%p371_p9)  ;;  %v650_v55 = vld [vmem:[%s1647_s5 + $0x10] sm:$0xff] (!%p371_p9)  ;;  %s1055_s23 = sshll.u32 (!%p371_p9), %s1552_s26, 3 }
  0x18   : > { %v534_v34 = vld [vmem:[%s1645_s3] sm:$0xff] (!%p371_p9)  ;;  %v649_v54 = vld [vmem:[%s1647_s5 + $0x8] sm:$0xff] (!%p371_p9)  ;;  %s1565_s19 = scalar_lea.vmem (!%p371_p9), [#allocation2], %s1055_s23 }
  0x19   : > { %v648_v53 = vld [vmem:[%s1647_s5] sm:$0xff] (!%p371_p9) }
  0x1a   : > { %433 = vperm.xlu0 (!%p371_p9), %1216, %v424_v4   ;;  %542 = vperm.xlu1 (!%p371_p9), %1217, %v537_v6  }
  0x1b   : > { %s416_s17 = scalar_select %p415_p10, %s1408_s25, 1  ;;  %v420_v5 = vld [vmem:[%s1663_s1] sm:$0xff]  ;;  %v421_v9 = vld [vmem:[%s1663_s1 + $0x8] sm:$0xff]  ;;  %v422_v12 = vld [vmem:[%s1663_s1 + $0x10] sm:$0xff] }
  0x1d   : > { %s1056_s20 = sshll.u32 %s416_s17, 3 }
  0x1e   : > { %s418_s16 = scalar_lea.vmem %s1662_s0, %s1056_s20  ;;  %547 = vperm.xlu0 %1216, %v538_v8   ;;  %552 = vperm.xlu1 %1217, %v539_v10   ;;  %v761_v10 = vld [vmem:[%s1649_s7] sm:$0xff]  ;;  %s414_s20 = scalar_lea.vmem [#allocation4], %s1552_s26 }
  0x1f   : > { %v1460_v7 = vld [vmem:[%s418_s16] sm:$0xff]  ;;  %s964_s28 = sshll.u32 %s414_s20, 4  ;;  %s1560_s16 = scalar_lea.hbm %s1654_s12, %s1070_s30  ;;  %s1562_s28 = int_to_ptr.vmem [resolvable:$true] %s964_s28 }
  0x20   : > { %1098 = vmatpush3.msra.mxu0 %v1460_v7  ;;  %s939_s0 = scalar_lea.sflag [#allocation5], %s1552_s26  ;;  %s1220_s29 = scalar_lea.vmem %s1562_s28, 16 }
  0x21   : > { %1100 = vmatmul.mubr.msk.f32.vlgmr.msra.gmra.mrb[0].mxu0 %vm441_vm1, %v420_v5  ;;  %1159 = vmatprep.subr.bf16.mxu0 %v1319_v17  ;;  %p1221_p11 = scmp.ne.s32.totalorder %s1562_s28, %s1220_s29  ;;  %s1320_s30 = smov [#allocation4]  }
  0x22   : > { %1102 = vmatprep.mubr.msk.f32.mxu0 %vm1317_vm0, %v1316_v0  ;;  %656 = vperm.xlu0 %1216, %v651_v11   ;;  %v841_v11 = vld [vmem:[%s1651_s9] sm:$0xff]  ;;  %s1224_s15 = sshll.u32 %s1320_s30, 4  ;;  %s1225_s15 = int_to_ptr.vmem [resolvable:$false] %s1224_s15 }
  0x23   : > { %661 = vperm.xlu1 %1217, %v652_v13   ;;  %p1222_p12 = pnand %p1221_p11, %p1425_p5  ;;  %s1226_s1 = scalar_lea.vmem %s1225_s15, 32 }
  0x24   : > { %p1227_p0 = scmp.lt.s32.totalorder %s1562_s28, %s1225_s15  ;;  %p1228_p1 = scmp.lt.s32.totalorder %s1226_s1, %s1220_s29 }
  0x25   : > { %1103 = vmatmul.mubr.msk.f32.gmra.mrb[2].mxu0 %vm441_vm1, %v421_v9  ;;  %p1223_p13 = pneg %p1222_p12 }
  0x26   : > { %1105 = vmatprep.mubr.msk.f32.mxu0 %vm1317_vm0, %v1316_v0  ;;  %666 = vperm.xlu0 %1216, %v653_v14   ;;  %p1229_p2 = por %p1228_p1, %p1227_p0 }
  0x27   : > { %765 = vperm.xlu1 %1217, %v762_v15  }
  0x28   : > { %p1230_p3 = pnand %p1229_p2, %p1223_p13 }
  0x29   : > { %1106 = vmatmul.mubr.msk.f32.gmra.mrb[4].mxu0 %vm441_vm1, %v422_v12 }
  0x2a   : > { %1129 = vmatprep.mubr.msk.f32.mxu0 %vm1317_vm0, %v1316_v0  ;;  %845 = vperm.xlu0 %1216, %v842_v16  }
  0x95   : > { %v429_v18 = vpop.permute.xlu0 %428  ;;  %v439_v28 = vpop.permute.xlu1 %438 }
  0x99   : > { %v434_v22 = vpop.permute.xlu0 %433  ;;  %v543_v39 = vpop.permute.xlu1 %542 }
  0x9d   : > { %v548_v41 = vpop.permute.xlu0 %547  ;;  %v553_v47 = vpop.permute.xlu1 %552 }
  0xa1   : > { %v657_v58 = vpop.permute.xlu0 %656 }
  0xa2   : > { %v662_v60 = vpop.permute.xlu1 %661 }
  0xa5   : > { %v667_v3 = vpop.permute.xlu0 %666 }
  0xa6   : > { %v766_v12 = vpop.permute.xlu1 %765 }
  0xf4   : > { %v517_v19 = vpop.f32.mrb[0].mxu0 }
  0xf5   : > { %v1101_v20 = vpop.f32.mrb[1].mxu0  ;;  %v518_v21 = vadd.f32 %v517_v19, %v429_v18 }
  0xf7   : > { %v531_v26 = vmax.f32 %v518_v21, 0.0 }
  0xf8   : > { %v522_v23 = vpop.f32.mrb[2].mxu0 }
  0xf9   : > { %v523_v24 = vadd.f32 %v522_v23, %v434_v22  ;;  %v1104_v25 = vpop.f32.mrb[3].mxu0 }
  0xfa   : > { %v846_v25 = vpop.permute.xlu0 %845 }
  0xfb   : > { %v532_v27 = vmax.f32 %v523_v24, 0.0 }
  0xfc   : > { %v527_v29 = vpop.f32.mrb[4].mxu0 }
  0xfd   : > { %v528_v30 = vadd.f32 %v527_v29, %v439_v28  ;;  %v1107_v31 = vpop.f32.mrb[5].mxu0  ;;  %v1157_v32 = vpack.c.bf16 %v532_v27, %v531_v26 }
  0xff   : > { %v533_v33 = vmax.f32 %v528_v30, 0.0  ;;  %1158 = vmatpush3.bf16.msra.mxu1 %v1157_v32 }
 0x100   : > { %1112 = vmatprep.subr.mxu1 %v1316_v0 }
 0x103   : > { %1113 = vmatpush3.msra.mxu1 %v533_v33 }
 0x104   : > { %1115 = vmatmul.mubr.msk.f32.vlgmr.msra.gmra.mrb[0].mxu1 %vm555_vm2, %v534_v34  ;;  %1162 = vmatprep.subr.bf16.mxu1 %v1319_v17 }
 0x105   : > { %1117 = vmatprep.mubr.msk.f32.mxu1 %vm1317_vm0, %v1316_v0 }
 0x108   : > { %1118 = vmatmul.mubr.msk.f32.gmra.mrb[2].mxu1 %vm555_vm2, %v535_v35 }
 0x109   : > { %1120 = vmatprep.mubr.msk.f32.mxu1 %vm1317_vm0, %v1316_v0 }
 0x10c   : > { %1121 = vmatmul.mubr.msk.f32.gmra.mrb[4].mxu1 %vm555_vm2, %v536_v36 }
 0x10d   : > { %1144 = vmatprep.mubr.msk.f32.mxu1 %vm1317_vm0, %v1316_v0 }
 0x1d7   : > { %v631_v37 = vpop.f32.mrb[0].mxu1 }
 0x1d8   : > { %v1116_v38 = vpop.f32.mrb[1].mxu1  ;;  %v632_v40 = vadd.f32 %v631_v37, %v543_v39 }
 0x1da   : > { %v645_v45 = vmax.f32 %v632_v40, 0.0 }
 0x1db   : > { %v636_v42 = vpop.f32.mrb[2].mxu1 }
 0x1dc   : > { %v637_v43 = vadd.f32 %v636_v42, %v548_v41  ;;  %v1119_v44 = vpop.f32.mrb[3].mxu1 }
 0x1de   : > { %v646_v46 = vmax.f32 %v637_v43, 0.0 }
 0x1df   : > { %v641_v48 = vpop.f32.mrb[4].mxu1 }
 0x1e0   : > { %v1160_v49 = vpack.c.bf16 %v646_v46, %v645_v45  ;;  %v642_v50 = vadd.f32 %v641_v48, %v553_v47  ;;  %v1122_v51 = vpop.f32.mrb[5].mxu1 }
 0x1e2   : > { %1161 = vmatpush3.bf16.msra.mxu0 %v1160_v49  ;;  %v647_v52 = vmax.f32 %v642_v50, 0.0 }
 0x1e3   : > { %1127 = vmatprep.subr.mxu0 %v1316_v0 }
 0x1e6   : > { %1128 = vmatpush3.msra.mxu0 %v647_v52 }
 0x1e7   : > { %1130 = vmatmul.mubr.msk.f32.vlgmr.msra.gmra.mrb[6].mxu0 %vm555_vm2, %v648_v53 }
 0x1e8   : > { %1132 = vmatprep.mubr.msk.f32.mxu0 %vm1317_vm0, %v1316_v0 }
 0x1eb   : > { %1133 = vmatmul.mubr.msk.f32.gmra.mrb[8].mxu0 %vm555_vm2, %v649_v54 }
 0x1ec   : > { %1135 = vmatprep.mubr.msk.f32.mxu0 %vm1317_vm0, %v1316_v0 }
 0x1ef   : > { %1136 = vmatmul.mubr.msk.f32.gmra.mrb[10].mxu0 %vm555_vm2, %v650_v55 }
 0x2ba   : > { %v744_v56 = vpop.f32.mrb[6].mxu0 }
 0x2bb   : > { %v1131_v57 = vpop.f32.mrb[7].mxu0  ;;  %v745_v59 = vadd.f32 %v744_v56, %v657_v58 }
 0x2bd   : > { %v758_v1 = vmax.f32 %v745_v59, 0.0 }
 0x2be   : > { %v749_v61 = vpop.f32.mrb[8].mxu0 }
 0x2bf   : > { %v750_v62 = vadd.f32 %v749_v61, %v662_v60  ;;  %v1134_v63 = vpop.f32.mrb[9].mxu0 }
 0x2c1   : > { %v759_v2 = vmax.f32 %v750_v62, 0.0 }
 0x2c2   : > { %v754_v4 = vpop.f32.mrb[10].mxu0 }
 0x2c3   : > { %v1163_v5 = vpack.c.bf16 %v759_v2, %v758_v1  ;;  %v755_v6 = vadd.f32 %v754_v4, %v667_v3  ;;  %v1137_v8 = vpop.f32.mrb[11].mxu0 }
 0x2c5   : > { %1164 = vmatpush3.bf16.msra.mxu1 %v1163_v5  ;;  %v760_v9 = vmax.f32 %v755_v6, 0.0 }
 0x2c6   : > { %1142 = vmatprep.subr.mxu1 %v1316_v0 }
 0x2c9   : > { %1143 = vmatpush3.msra.mxu1 %v760_v9 }
 0x2ca   : > { %1145 = vmatmul.mubr.msk.f32.vlgmr.msra.gmra.mrb[6].mxu1 %vm555_vm2, %v761_v10  ;;  %1165 = vmatprep.subr.bf16.mxu1 %v1319_v17 }
 0x2cb   : > { %1167 = vmatpush3.bf16.msra.mxu1 %v1163_v5  ;;  %1153 = vmatprep.mubr.msk.f32.mxu1 %vm1317_vm0, %v1316_v0 }
 0x2cc   : > { %1151 = vmatprep.subr.mxu1 %v1316_v0 }
 0x2cf   : > { %1152 = vmatpush3.msra.mxu1 %v760_v9 }
 0x2d0   : > { %1154 = vmatmul.mubr.msk.f32.vlgmr.msra.gmra.mrb[8].mxu1 %vm555_vm2, %v841_v11 }
 0x39d   : > { %v837_v13 = vpop.f32.mrb[6].mxu1 }
 0x39e   : > { %v838_v14 = vadd.f32 %v837_v13, %v766_v12  ;;  %v1146_v15 = vpop.f32.mrb[7].mxu1 }
 0x3a0   : > { %v921_v16 = vmul.f32 1.442695, %v838_v14  ;;  %v926_v17 = vrot.slane %v838_v14, 4 }
 0x3a2   : > { %1218 = vpow2.f32 %v921_v16  ;;  %v927_v18 = vadd.f32 %v926_v17, %v838_v14 }
 0x3a3   : > { %v917_v19 = vpop.f32.mrb[8].mxu1 }
 0x3a4   : > { %v928_v0 = vrot.slane %v927_v18, 2  ;;  %v1155_v20 = vpop.f32.mrb[9].mxu1  ;;  %v918_v26 = vadd.f32 %v917_v19, %v846_v25 }
 0x3a6   : > { %v929_v21 = vadd.f32 %v928_v0, %v927_v18 }
 0x3a8   : > { %v930_v22 = vrot.slane %v929_v21, 1 }
 0x3aa   : > { %v931_v23 = vadd.f32 %v930_v22, %v929_v21 }
 0x3ac   : > { %v1219_v24 = vpop.eup %1218  ;;  %932 = vst [vmem:[%s414_s20] sm:$0x1] %v931_v23 }
 0x3ad   : > { %v923_v27 = vmul.f32 %v1219_v24, %v1460_v7 }
 0x3ae   : > { %1233 = shalt.err (!%p1230_p3)
}
 0x3af   : > { %s1234_s23 = scalar_lea.hbm %s1560_s16, 16  ;;  %s1238_s30 = scalar_lea.hbm %s1654_s12, 32 }
 0x3b0   : > { %p1235_p4 = scmp.ne.s32.totalorder %s1560_s16, %s1234_s23  ;;  %p1239_p9 = scmp.lt.u32.totalorder %s1560_s16, %s1654_s12 }
 0x3b1   : > { %p1240_p10 = scmp.lt.u32.totalorder %s1238_s30, %s1234_s23  ;;  %p1242_p12 = scmp.lt.u32.totalorder %s1234_s23, %s1560_s16 }
 0x3b2   : > { %p1236_p7 = pnand %p1235_p4, %p1425_p5 }
 0x3b3   : > { %p1241_p11 = por %p1240_p10, %p1239_p9 }
 0x3b4   : > { %p1237_p8 = pneg %p1236_p7 }
 0x3b5   : > { %p1243_p13 = por %p1242_p12, %p1241_p11 }
 0x3b7   : > { %p1244_p0 = pnand %p1243_p13, %p1237_p8 }
 0x3b9   : > { %1247 = shalt.err (!%p1244_p0)
}
 0x3ba   : > { %1169 = dma.vmem_to_hbm [thread:$0]  (%p1425_p5), %s1562_s28, 16, %s1560_s16, %s939_s0   ;;  %v924_v7 = vadd.f32 %v923_v27, %v918_v26 }
 0x3bb   : > { %s1664_s1 = sshll.u32 %s1408_s25, 7  ;;  %s1665_s23 = sshll.u32 %s1565_s19, 4  ;;  %s1600_s23 = int_to_ptr.vmem [resolvable:$true] %s1665_s23 }
 0x3bc   : > { %s1596_s29 = scalar_lea.hbm %s1653_s11, %s1664_s1  ;;  %925 = vst [vmem:[%s1565_s19] sm:$0xff] %v924_v7  ;;  %s934_s20 = scalar_lea.sflag [#allocation3], %s1552_s26 }
 0x3bd   : > { %s1248_s30 = scalar_lea.vmem %s1600_s23, 128  ;;  %s1321_s0 = smov [#allocation2]  }
 0x3be   : > { %p1249_p1 = scmp.ne.s32.totalorder %s1600_s23, %s1248_s30  ;;  %s1252_s25 = sshll.u32 %s1321_s0, 4  ;;  %s1253_s25 = int_to_ptr.vmem [resolvable:$false] %s1252_s25 }
 0x3bf   : > { %s1254_s28 = scalar_lea.vmem %s1253_s25, 256  ;;  %p1255_p4 = scmp.lt.s32.totalorder %s1600_s23, %s1253_s25 }
 0x3c0   : > { %p1250_p2 = pnand %p1249_p1, %p1425_p5  ;;  %p1256_p7 = scmp.lt.s32.totalorder %s1254_s28, %s1248_s30 }
 0x3c2   : > { %p1251_p3 = pneg %p1250_p2  ;;  %p1257_p8 = por %p1256_p7, %p1255_p4 }
 0x3c4   : > { %p1258_p9 = pnand %p1257_p8, %p1251_p3 }
 0x3c6   : > { %1261 = shalt.err (!%p1258_p9)
}
 0x3c7   : > { %s1262_s26 = scalar_lea.hbm %s1596_s29, 128  ;;  %s1266_s15 = scalar_lea.hbm %s1653_s11, 256 }
 0x3c8   : > { %p1263_p10 = scmp.ne.s32.totalorder %s1596_s29, %s1262_s26  ;;  %p1267_p13 = scmp.lt.u32.totalorder %s1596_s29, %s1653_s11 }
 0x3c9   : > { %p1268_p0 = scmp.lt.u32.totalorder %s1266_s15, %s1262_s26  ;;  %p1270_p2 = scmp.lt.u32.totalorder %s1262_s26, %s1596_s29 }
 0x3ca   : > { %p1264_p11 = pnand %p1263_p10, %p1425_p5 }
 0x3cb   : > { %p1269_p1 = por %p1268_p0, %p1267_p13 }
 0x3cc   : > { %p1265_p12 = pneg %p1264_p11 }
 0x3cd   : > { %p1271_p3 = por %p1270_p2, %p1269_p1 }
 0x3cf   : > { %p1272_p4 = pnand %p1271_p3, %p1265_p12 }
 0x3d1   : > { %1275 = shalt.err (!%p1272_p4)
}
 0x3d2   : > { %1168 = dma.vmem_to_hbm [thread:$0]  (%p1425_p5), %s1600_s23, 128, %s1596_s29, %s934_s20  }
 0x3d3 PF: > { %p1179_p7 = scmp.ge.s32.totalorder %s1314_s24, 2  ;;  %s976_s17 = sand.u32 1, %s1302_s21  }
 0x3d4   : > { %s977_s30 = scalar_lea.sflag [#allocation3], %s976_s17 }
 0x3d5   : > { %p1173_p8 = pnand %p1179_p7, %p1429_p6 }
 0x3d7   : > { %1293 = dma.done.wait (!%p1173_p8), %s977_s30, 128  }
 0x3d8   : > { %1295 = vsyncadd (!%p1173_p8), %s977_s30, 4294967168  ;;  %s986_s0 = scalar_lea.sflag [#allocation5], %s976_s17 }
 0x3d9   : > { %1297 = dma.done.wait (!%p1173_p8), %s986_s0, 16  }
 0x3da   : > { %1299 = vsyncadd (!%p1173_p8), %s986_s0, 4294967280  ;;  %s1666_s13 = sld [smem:[#allocation8_spill]]  ;;  %s1667_s23 = sld [smem:[#allocation9_spill]] }
 0x3db   : > { %p26_p5 = scmp.ge.s32.totalorder %s1412_s27, 4   ;;  %s1668_s21 = smov %s1306_s22 }
 0x3dc   : > { %s1670_s24 = smov %s1412_s27 }
 0x3dd   :  { %28 = sbr.rel (!%p26_p5) target bundleno = 8 (0x8), region = 116 }
 0x3e0   : > { %s1669_s22 = smov %s1666_s13 }
 0x3e4   :  { %990 = vsyncpa [#allocation3], 1 }
 0x3e5   :  { %992 = vsyncpa [#allocation3 + $0x1], 1 }
 0x3e6   :  { %993 = vsyncpa [#allocation5], 1 }
 0x3e7   :  { %995 = vsyncpa [#allocation5 + $0x1], 1 }

</bundles_post_ra>
